<compile_context>
chip_gen: v7x
topology: tpu7x:2x2x1
jax: 0.10.0
libtpu: 0.0.40
codegen_flags: <defaults>
</compile_context>

<pallas_src>
import jax
import jax.numpy as jnp
from jax.experimental import pallas as pl
from jax.experimental.pallas import tpu as pltpu


def _round_up(x, m):
    return ((x + m - 1) // m) * m


# ----------------------------------------------------------------------------
# Fused gather + TransE scoring kernel (one batch tile of tb triples per step).
# ----------------------------------------------------------------------------
def _fused_transe_kernel(
    src_idx_ref, rel_idx_ref, dst_idx_ref,   # SMEM scalar-prefetch: (B_pad,) int32
    ent_hbm, rel_hbm,                        # HBM (ANY): (E, D), (R, D) float32
    out_ref,                                 # VMEM out block: (1, tb) float32
    src_buf, rel_buf, dst_buf,               # VMEM scratch: (tb, D) float32
    sem,                                     # DMA semaphores: (3,)
):
    i = pl.program_id(0)
    tb = src_buf.shape[0]
    base = i * tb

    # Issue every row gather for this tile (3 tables x tb rows); DMAs overlap
    # each other in flight while we keep issuing.
    @pl.loop(0, tb)
    def _(r):
        s_id = src_idx_ref[base + r]
        r_id = rel_idx_ref[base + r]
        d_id = dst_idx_ref[base + r]
        pltpu.make_async_copy(
            ent_hbm.at[pl.ds(s_id, 1)], src_buf.at[pl.ds(r, 1)], sem.at[0]).start()
        pltpu.make_async_copy(
            rel_hbm.at[pl.ds(r_id, 1)], rel_buf.at[pl.ds(r, 1)], sem.at[1]).start()
        pltpu.make_async_copy(
            ent_hbm.at[pl.ds(d_id, 1)], dst_buf.at[pl.ds(r, 1)], sem.at[2]).start()

    # Wait for all issued copies (one wait per copy, matching sizes).
    @pl.loop(0, tb)
    def _(r):
        pltpu.make_async_copy(
            ent_hbm.at[pl.ds(0, 1)], src_buf.at[pl.ds(r, 1)], sem.at[0]).wait()
        pltpu.make_async_copy(
            rel_hbm.at[pl.ds(0, 1)], rel_buf.at[pl.ds(r, 1)], sem.at[1]).wait()
        pltpu.make_async_copy(
            ent_hbm.at[pl.ds(0, 1)], dst_buf.at[pl.ds(r, 1)], sem.at[2]).wait()

    # TransE: score = -|| s + r - d ||_1   (VPU add/abs + XLU lane reduction).
    diff = src_buf[...] + rel_buf[...] - dst_buf[...]
    scores = -jnp.sum(jnp.abs(diff), axis=-1)          # (tb,)
    out_ref[0, :] = scores                             # lane-dense store


def transe_score_pallas(ent_embed, rel_embed, src, rel, dst, *, tb=1024):
    """score[i] = -|| ent[src[i]] + rel[rel[i]] - ent[dst[i]] ||_1  (float32)."""
    B = int(src.shape[0])
    _, D = ent_embed.shape

    # Batch tile: large (amortize ~0.35us/step overhead) and a multiple of 128
    # (lane-dense output), but never absurdly larger than the batch itself.
    tb = max(128, min(int(tb), _round_up(B, 128)))
    tb = _round_up(tb, 128)
    b_pad = _round_up(B, tb)
    num_tiles = b_pad // tb

    # Pad index vectors (padded rows gather row 0 and are sliced off below).
    src_p = jnp.zeros((b_pad,), jnp.int32).at[:B].set(src.astype(jnp.int32))
    rel_p = jnp.zeros((b_pad,), jnp.int32).at[:B].set(rel.astype(jnp.int32))
    dst_p = jnp.zeros((b_pad,), jnp.int32).at[:B].set(dst.astype(jnp.int32))

    grid_spec = pltpu.PrefetchScalarGridSpec(
        num_scalar_prefetch=3,                      # src / rel / dst -> SMEM
        grid=(num_tiles,),
        in_specs=[
            pl.BlockSpec(memory_space=pl.ANY),      # ent_embed stays in HBM
            pl.BlockSpec(memory_space=pl.ANY),      # rel_embed stays in HBM
        ],
        out_specs=pl.BlockSpec((1, tb), lambda i, s, r, d: (0, i)),
        scratch_shapes=[
            pltpu.VMEM((tb, D), jnp.float32),       # gathered src rows
            pltpu.VMEM((tb, D), jnp.float32),       # gathered rel rows
            pltpu.VMEM((tb, D), jnp.float32),       # gathered dst rows
            pltpu.SemaphoreType.DMA((3,)),
        ],
    )

    scores = pl.pallas_call(
        _fused_transe_kernel,
        out_shape=jax.ShapeDtypeStruct((1, b_pad), jnp.float32),
        grid_spec=grid_spec,
        compiler_params=pltpu.CompilerParams(
            dimension_semantics=("parallel",),       # v7x: shard tiles over 2 TCs
            vmem_limit_bytes=32 * 1024 * 1024,       # v5e default scoped is 16 MiB
        ),
    )(src_p, rel_p, dst_p,
      ent_embed.astype(jnp.float32), rel_embed.astype(jnp.float32))

    return scores.reshape(b_pad)[:B]


# ----------------------------------------------------------------------------
# Model: parameters + forward (mirrors preTrain_model with a TransE decoder).
# ----------------------------------------------------------------------------
class PreTrainModelPallas:
    def __init__(self, entity_num, relation_num, embedding_dim, key,
                 eMat=None, rMat=None):
        self.embedding_dim = embedding_dim
        k_ent, k_rel = jax.random.split(key)
        mean = 1.0 / (embedding_dim ** 0.5)
        if eMat is not None:
            self.ent_embed = jnp.asarray(eMat[:, :embedding_dim], jnp.float32)
        else:
            # mirrors: weight.normal_(1/sqrt(d)); weight.renorm_(2, 0, 1)
            ent = jax.random.normal(k_ent, (entity_num, embedding_dim),
                                    jnp.float32) + mean
            self.ent_embed = self._renorm(ent, 1.0)
        if rMat is not None:
            self.rel_embed = jnp.asarray(rMat[:, :embedding_dim], jnp.float32)
        else:
            rel = jax.random.normal(k_rel, (relation_num, embedding_dim),
                                    jnp.float32) + mean
            self.rel_embed = self._renorm(rel, 1.0)

    @staticmethod
    def _renorm(w, maxnorm):
        norms = jnp.linalg.norm(w, axis=-1, keepdims=True)
        scale = jnp.minimum(1.0, maxnorm / jnp.maximum(norms, 1e-12))
        return w * scale

    def constraint(self):
        self.ent_embed = self._renorm(self.ent_embed, 1.0)
        self.rel_embed = self._renorm(self.rel_embed, 1.0)

    def forward(self, src, rel, dst, mode=None, *, tb=1024):
        # TODO(synk): `mode` ('head-batch'/'tail-batch') only changes broadcasting
        # for all-entity negative scoring in the original decoder; pointwise
        # triple scoring (what this forward computes) is mode-independent.
        return transe_score_pallas(self.ent_embed, self.rel_embed,
                                   src, rel, dst, tb=tb)

    def score(self, src, rel, dst, mode=None):
        return self.forward(src, rel, dst, mode)


# ----------------------------------------------------------------------------
# Self-test
# ----------------------------------------------------------------------------
if __name__ == "__main__":
    key = jax.random.PRNGKey(0)
    k_model, k_src, k_rel, k_dst = jax.random.split(key, 4)

    ENTITY_NUM, RELATION_NUM, EMBED_DIM = 64, 16, 128
    model = PreTrainModelPallas(ENTITY_NUM, RELATION_NUM, EMBED_DIM, k_model)

    def reference(s_idx, r_idx, d_idx):
        s = model.ent_embed[s_idx]
        d = model.ent_embed[d_idx]
        r = model.rel_embed[r_idx]
        return -jnp.sum(jnp.abs(s + r - d), axis=-1)

    # (1) small batch (single grid tile, padded 8 -> 128)
    B1 = 8
    src = jax.random.randint(k_src, (B1,), 0, ENTITY_NUM, dtype=jnp.int32)
    rel = jax.random.randint(k_rel, (B1,), 0, RELATION_NUM, dtype=jnp.int32)
    dst = jax.random.randint(k_dst, (B1,), 0, ENTITY_NUM, dtype=jnp.int32)
    out1 = jax.block_until_ready(model.forward(src, rel, dst, mode="tail-batch"))
    assert out1.shape == (B1,)
    assert jnp.allclose(out1, reference(src, rel, dst), atol=1e-4, rtol=1e-4), \
        "mismatch vs reference (single tile)"

    # (2) ragged batch spanning multiple grid tiles (exercises padding + grid>1)
    B2 = 200
    k2a, k2b, k2c = jax.random.split(jax.random.PRNGKey(1), 3)
    src2 = jax.random.randint(k2a, (B2,), 0, ENTITY_NUM, dtype=jnp.int32)
    rel2 = jax.random.randint(k2b, (B2,), 0, RELATION_NUM, dtype=jnp.int32)
    dst2 = jax.random.randint(k2c, (B2,), 0, ENTITY_NUM, dtype=jnp.int32)
    out2 = jax.block_until_ready(
        model.forward(src2, rel2, dst2, mode="head-batch", tb=128))
    assert out2.shape == (B2,)
    assert jnp.allclose(out2, reference(src2, rel2, dst2), atol=1e-4, rtol=1e-4), \
        "mismatch vs reference (multi tile)"

    print("KERNEL_OK")
</pallas_src>

<mosaic_0001>
module attributes {stable_mosaic.version = 11 : i64} {
  func.func @_fused_transe_kernel(%arg0: i32, %arg1: memref<128xi32, #tpu.memory_space<smem>>, %arg2: memref<128xi32, #tpu.memory_space<smem>>, %arg3: memref<128xi32, #tpu.memory_space<smem>>, %arg4: memref<64x128xf32, #tpu.memory_space<any>>, %arg5: memref<16x128xf32, #tpu.memory_space<any>>, %arg6: memref<1x128xf32, #tpu.memory_space<vmem>>, %arg7: memref<128x128xf32, #tpu.memory_space<vmem>>, %arg8: memref<128x128xf32, #tpu.memory_space<vmem>>, %arg9: memref<128x128xf32, #tpu.memory_space<vmem>>, %arg10: memref<3x!tpu.dma_semaphore, #tpu.memory_space<semaphore_mem>>) attributes {dimension_semantics = [#tpu.dimension_semantics<parallel>], iteration_bounds = array<i64: 1>, scalar_prefetch = 3 : i64, scratch_operands = 4 : i64, tpu.core_type = #tpu.core_type<tc>, window_params = [{}, {}, {transform_indices = @transform_2, window_bounds = array<i64: 1, 128>}]} {
    %c128_i32 = arith.constant 128 : i32
    %0 = arith.muli %arg0, %c128_i32 : i32
    %c0_i32 = arith.constant 0 : i32
    %c128_i32_0 = arith.constant 128 : i32
    %1 = arith.addi %c0_i32, %c128_i32_0 : i32
    %c1_i32 = arith.constant 1 : i32
    scf.for %arg11 = %c0_i32 to %1 step %c1_i32  : i32 {
      %c1_i32_14 = arith.constant 1 : i32
      %15 = arith.muli %arg11, %c1_i32_14 : i32
      %c0_i32_15 = arith.constant 0 : i32
      %16 = arith.addi %c0_i32_15, %15 : i32
      %17 = arith.addi %0, %16 : i32
      %18 = arith.index_cast %17 : i32 to index
      %19 = memref.load %arg1[%18] : memref<128xi32, #tpu.memory_space<smem>>
      %20 = arith.addi %0, %16 : i32
      %21 = arith.index_cast %20 : i32 to index
      %22 = memref.load %arg2[%21] : memref<128xi32, #tpu.memory_space<smem>>
      %23 = arith.addi %0, %16 : i32
      %24 = arith.index_cast %23 : i32 to index
      %25 = memref.load %arg3[%24] : memref<128xi32, #tpu.memory_space<smem>>
      %c0_i32_16 = arith.constant 0 : i32
      %c0_i32_17 = arith.constant 0 : i32
      %26 = tpu.memref_slice %arg4[%19, %c0_i32_17] : memref<64x128xf32, #tpu.memory_space<any>> -> memref<1x128xf32, #tpu.memory_space<any>>
      %c0_i32_18 = arith.constant 0 : i32
      %27 = tpu.memref_slice %arg7[%16, %c0_i32_18] : memref<128x128xf32, #tpu.memory_space<vmem>> -> memref<1x128xf32, #tpu.memory_space<vmem>>
      %28 = tpu.memref_slice %arg10[%c0_i32_16] : memref<3x!tpu.dma_semaphore, #tpu.memory_space<semaphore_mem>> -> memref<1x!tpu.dma_semaphore, #tpu.memory_space<semaphore_mem>>
      %29 = tpu.memref_squeeze %28 : memref<1x!tpu.dma_semaphore, #tpu.memory_space<semaphore_mem>> -> memref<!tpu.dma_semaphore, #tpu.memory_space<semaphore_mem>>
      tpu.enqueue_dma source(%26 : memref<1x128xf32, #tpu.memory_space<any>>) target(%27 : memref<1x128xf32, #tpu.memory_space<vmem>>) target_semaphore(%29 : memref<!tpu.dma_semaphore, #tpu.memory_space<semaphore_mem>>)
      %c1_i32_19 = arith.constant 1 : i32
      %c0_i32_20 = arith.constant 0 : i32
      %30 = tpu.memref_slice %arg5[%22, %c0_i32_20] : memref<16x128xf32, #tpu.memory_space<any>> -> memref<1x128xf32, #tpu.memory_space<any>>
      %c0_i32_21 = arith.constant 0 : i32
      %31 = tpu.memref_slice %arg8[%16, %c0_i32_21] : memref<128x128xf32, #tpu.memory_space<vmem>> -> memref<1x128xf32, #tpu.memory_space<vmem>>
      %32 = tpu.memref_slice %arg10[%c1_i32_19] : memref<3x!tpu.dma_semaphore, #tpu.memory_space<semaphore_mem>> -> memref<1x!tpu.dma_semaphore, #tpu.memory_space<semaphore_mem>>
      %33 = tpu.memref_squeeze %32 : memref<1x!tpu.dma_semaphore, #tpu.memory_space<semaphore_mem>> -> memref<!tpu.dma_semaphore, #tpu.memory_space<semaphore_mem>>
      tpu.enqueue_dma source(%30 : memref<1x128xf32, #tpu.memory_space<any>>) target(%31 : memref<1x128xf32, #tpu.memory_space<vmem>>) target_semaphore(%33 : memref<!tpu.dma_semaphore, #tpu.memory_space<semaphore_mem>>)
      %c2_i32 = arith.constant 2 : i32
      %c0_i32_22 = arith.constant 0 : i32
      %34 = tpu.memref_slice %arg4[%25, %c0_i32_22] : memref<64x128xf32, #tpu.memory_space<any>> -> memref<1x128xf32, #tpu.memory_space<any>>
      %c0_i32_23 = arith.constant 0 : i32
      %35 = tpu.memref_slice %arg9[%16, %c0_i32_23] : memref<128x128xf32, #tpu.memory_space<vmem>> -> memref<1x128xf32, #tpu.memory_space<vmem>>
      %36 = tpu.memref_slice %arg10[%c2_i32] : memref<3x!tpu.dma_semaphore, #tpu.memory_space<semaphore_mem>> -> memref<1x!tpu.dma_semaphore, #tpu.memory_space<semaphore_mem>>
      %37 = tpu.memref_squeeze %36 : memref<1x!tpu.dma_semaphore, #tpu.memory_space<semaphore_mem>> -> memref<!tpu.dma_semaphore, #tpu.memory_space<semaphore_mem>>
      tpu.enqueue_dma source(%34 : memref<1x128xf32, #tpu.memory_space<any>>) target(%35 : memref<1x128xf32, #tpu.memory_space<vmem>>) target_semaphore(%37 : memref<!tpu.dma_semaphore, #tpu.memory_space<semaphore_mem>>)
    }
    %c128_i32_1 = arith.constant 128 : i32
    %c0_i32_2 = arith.constant 0 : i32
    %c128_i32_3 = arith.constant 128 : i32
    %2 = arith.addi %c0_i32_2, %c128_i32_3 : i32
    %c1_i32_4 = arith.constant 1 : i32
    scf.for %arg11 = %c0_i32_2 to %2 step %c1_i32_4  : i32 {
      %c1_i32_14 = arith.constant 1 : i32
      %15 = arith.muli %arg11, %c1_i32_14 : i32
      %c0_i32_15 = arith.constant 0 : i32
      %16 = arith.addi %c0_i32_15, %15 : i32
      %c0_i32_16 = arith.constant 0 : i32
      %c0_i32_17 = arith.constant 0 : i32
      %c0_i32_18 = arith.constant 0 : i32
      %17 = tpu.memref_slice %arg4[%c0_i32_17, %c0_i32_18] : memref<64x128xf32, #tpu.memory_space<any>> -> memref<1x128xf32, #tpu.memory_space<any>>
      %c0_i32_19 = arith.constant 0 : i32
      %18 = tpu.memref_slice %arg7[%16, %c0_i32_19] : memref<128x128xf32, #tpu.memory_space<vmem>> -> memref<1x128xf32, #tpu.memory_space<vmem>>
      %19 = tpu.memref_slice %arg10[%c0_i32_16] : memref<3x!tpu.dma_semaphore, #tpu.memory_space<semaphore_mem>> -> memref<1x!tpu.dma_semaphore, #tpu.memory_space<semaphore_mem>>
      %20 = tpu.memref_squeeze %19 : memref<1x!tpu.dma_semaphore, #tpu.memory_space<semaphore_mem>> -> memref<!tpu.dma_semaphore, #tpu.memory_space<semaphore_mem>>
      tpu.wait_dma2 semaphore(%20 : memref<!tpu.dma_semaphore, #tpu.memory_space<semaphore_mem>>) src(%17 : memref<1x128xf32, #tpu.memory_space<any>>) dst(%18 : memref<1x128xf32, #tpu.memory_space<vmem>>)
      %c1_i32_20 = arith.constant 1 : i32
      %c0_i32_21 = arith.constant 0 : i32
      %c0_i32_22 = arith.constant 0 : i32
      %21 = tpu.memref_slice %arg5[%c0_i32_21, %c0_i32_22] : memref<16x128xf32, #tpu.memory_space<any>> -> memref<1x128xf32, #tpu.memory_space<any>>
      %c0_i32_23 = arith.constant 0 : i32
      %22 = tpu.memref_slice %arg8[%16, %c0_i32_23] : memref<128x128xf32, #tpu.memory_space<vmem>> -> memref<1x128xf32, #tpu.memory_space<vmem>>
      %23 = tpu.memref_slice %arg10[%c1_i32_20] : memref<3x!tpu.dma_semaphore, #tpu.memory_space<semaphore_mem>> -> memref<1x!tpu.dma_semaphore, #tpu.memory_space<semaphore_mem>>
      %24 = tpu.memref_squeeze %23 : memref<1x!tpu.dma_semaphore, #tpu.memory_space<semaphore_mem>> -> memref<!tpu.dma_semaphore, #tpu.memory_space<semaphore_mem>>
      tpu.wait_dma2 semaphore(%24 : memref<!tpu.dma_semaphore, #tpu.memory_space<semaphore_mem>>) src(%21 : memref<1x128xf32, #tpu.memory_space<any>>) dst(%22 : memref<1x128xf32, #tpu.memory_space<vmem>>)
      %c2_i32 = arith.constant 2 : i32
      %c0_i32_24 = arith.constant 0 : i32
      %c0_i32_25 = arith.constant 0 : i32
      %25 = tpu.memref_slice %arg4[%c0_i32_24, %c0_i32_25] : memref<64x128xf32, #tpu.memory_space<any>> -> memref<1x128xf32, #tpu.memory_space<any>>
      %c0_i32_26 = arith.constant 0 : i32
      %26 = tpu.memref_slice %arg9[%16, %c0_i32_26] : memref<128x128xf32, #tpu.memory_space<vmem>> -> memref<1x128xf32, #tpu.memory_space<vmem>>
      %27 = tpu.memref_slice %arg10[%c2_i32] : memref<3x!tpu.dma_semaphore, #tpu.memory_space<semaphore_mem>> -> memref<1x!tpu.dma_semaphore, #tpu.memory_space<semaphore_mem>>
      %28 = tpu.memref_squeeze %27 : memref<1x!tpu.dma_semaphore, #tpu.memory_space<semaphore_mem>> -> memref<!tpu.dma_semaphore, #tpu.memory_space<semaphore_mem>>
      tpu.wait_dma2 semaphore(%28 : memref<!tpu.dma_semaphore, #tpu.memory_space<semaphore_mem>>) src(%25 : memref<1x128xf32, #tpu.memory_space<any>>) dst(%26 : memref<1x128xf32, #tpu.memory_space<vmem>>)
    }
    %c128_i32_5 = arith.constant 128 : i32
    %c0 = arith.constant 0 : index
    %c0_6 = arith.constant 0 : index
    %3 = vector.load %arg7[%c0, %c0_6] : memref<128x128xf32, #tpu.memory_space<vmem>>, vector<128x128xf32>
    %c0_7 = arith.constant 0 : index
    %c0_8 = arith.constant 0 : index
    %4 = vector.load %arg8[%c0_7, %c0_8] : memref<128x128xf32, #tpu.memory_space<vmem>>, vector<128x128xf32>
    %5 = arith.addf %3, %4 : vector<128x128xf32>
    %c0_9 = arith.constant 0 : index
    %c0_10 = arith.constant 0 : index
    %6 = vector.load %arg9[%c0_9, %c0_10] : memref<128x128xf32, #tpu.memory_space<vmem>>, vector<128x128xf32>
    %7 = arith.subf %5, %6 : vector<128x128xf32>
    %8 = math.absf %7 : vector<128x128xf32>
    %cst = arith.constant dense<0.000000e+00> : vector<128xf32>
    %9 = vector.multi_reduction <add>, %8, %cst [1] : vector<128x128xf32> to vector<128xf32>
    %cst_11 = arith.constant 0.000000e+00 : f32
    %10 = vector.broadcast %cst_11 : f32 to vector<128xf32>
    %11 = arith.subf %10, %9 : vector<128xf32>
    %c0_12 = arith.constant 0 : index
    %c0_13 = arith.constant 0 : index
    %12 = vector.load %arg6[%c0_12, %c0_13] : memref<1x128xf32, #tpu.memory_space<vmem>>, vector<1x128xf32>
    %13 = vector.shape_cast %12 : vector<1x128xf32> to vector<128xf32>
    %14 = vector.shape_cast %11 : vector<128xf32> to vector<1x128xf32>
    tpu.vector_store %arg6[%c0_12, %c0_13], %14 {strides = array<i32>} : memref<1x128xf32, #tpu.memory_space<vmem>>, vector<1x128xf32>,
    return
  }
  func.func @transform_2(%arg0: i32, %arg1: memref<128xi32, #tpu.memory_space<smem>>, %arg2: memref<128xi32, #tpu.memory_space<smem>>, %arg3: memref<128xi32, #tpu.memory_space<smem>>) -> (i32, i32) {
    %c0_i32 = arith.constant 0 : i32
    %c0_i32_0 = arith.constant 0 : i32
    return %c0_i32, %arg0 : i32, i32
  }
}

</mosaic_0001>

<bundles_post_ra>
// kernel: tpu_custom_call.1
= control target key start
LH: loop header
LB: loop body
LE: loop exit
PB: predicated region body
PF: predicated region fallthrough
CT: control target
= control target key end

     0   :  { %s773_s0 = inlined_call_operand.hbm [shape: s32[128], index: 0, kind: input, shape index: {}]   ;;  %s774_s3 = inlined_call_operand.hbm [shape: f32[64,128], index: 3, kind: input, shape index: {}]   ;;  %s775_s4 = inlined_call_operand.hbm [shape: f32[16,128], index: 4, kind: input, shape index: {}]   ;;  %s776_s5 = inlined_call_operand.hbm [shape: f32[1,128], index: 5, kind: output, shape index: {}]   ;;  %s777_s1 = inlined_call_operand.vmem [shape: s32[128], index: 1, kind: input, shape index: {}]   ;;  %s778_s2 = inlined_call_operand.vmem [shape: s32[128], index: 2, kind: input, shape index: {}]  }
   0x1   :  { %s445_s20 = scalar_lea.hbm %s773_s0, 16 }
   0x2   :  { %p446_p0 = scmp.ne.s32.totalorder %s773_s0, %s445_s20  ;;  %p449_p1 = scmp.lt.u32.totalorder %s445_s20, %s773_s0 }
   0x4   :  { %p451_p2 = pnand %p449_p1, %p446_p0 }
   0x6   :  { %454 = shalt.err (!%p451_p2)  }
   0x7   :  { %s599_s25 = smov [#allocation7]   ;;  %s12_s30 = sshll.u32 %s777_s1, 4  ;;  %s13_s30 = int_to_ptr.vmem [resolvable:$true] %s12_s30 }
   0x8   :  { %11 = dma.hbm_to_smem %s773_s0, 16, %s599_s25, [#allocation6] }
   0x9   :  { %s16_s8 = sshll.u32 %s778_s2, 4  ;;  %s455_s9 = scalar_lea.vmem %s13_s30, 16  ;;  %s17_s8 = int_to_ptr.vmem [resolvable:$true] %s16_s8 }
   0xa   :  { %p456_p3 = scmp.ne.s32.totalorder %s13_s30, %s455_s9  ;;  %p460_p4 = scmp.lt.s32.totalorder %s13_s30, %s13_s30 }
   0xb   :  { %p461_p5 = scmp.lt.s32.totalorder %s455_s9, %s455_s9 }
   0xd   :  { %p462_p6 = por %p461_p5, %p460_p4 }
   0xf   :  { %p463_p7 = pnand %p462_p6, %p456_p3 }
  0x11   :  { %466 = shalt.err (!%p463_p7)  }
  0x12   :  { %s600_s10 = smov [#allocation8]   ;;  %s467_s0 = scalar_lea.vmem %s17_s8, 16 }
  0x13   :  { %15 = dma.vmem_to_smem %s13_s30, 16, %s600_s10, [#allocation6] }
  0x14   :  { %p468_p8 = scmp.ne.s32.totalorder %s17_s8, %s467_s0  ;;  %p472_p9 = scmp.lt.s32.totalorder %s17_s8, %s17_s8 }
  0x15   :  { %p473_p10 = scmp.lt.s32.totalorder %s467_s0, %s467_s0 }
  0x17   :  { %p474_p11 = por %p473_p10, %p472_p9 }
  0x19   :  { %p475_p12 = pnand %p474_p11, %p468_p8 }
  0x1b   :  { %478 = shalt.err (!%p475_p12)  }
  0x1c   :  { %s601_s1 = smov [#allocation9]  }
  0x1d   :  { %19 = dma.vmem_to_smem %s17_s8, 16, %s601_s1, [#allocation6] }
  0x1e   :  { %581 = dma.done.wait [#allocation6], 48 }
  0x1f   :  { %582 = vsyncadd [#allocation6], 4294967248 }
  0x20   :  { %21 = sfence }
  0x21   :  { %22 = vsyncpa [#allocation11], 0  ;;  %s654_s2 = smov 0  }
  0x22 LB: > { %s31_s11 = sld [smem:[#allocation7 + %s593_s2]]  ;;  %s36_s12 = scalar_lea.vmem [#allocation2], %s593_s2  ;;  %s593_s2 = sphi %s654_s2, %s29_s2  }
  0x23   : > { %s44_s13 = sshll.u32 %s36_s12, 4  ;;  %s662_s14 = sld [smem:[#allocation8 + %s593_s2]]  ;;  %s668_s13 = int_to_ptr.vmem [resolvable:$true] %s44_s13 }
  0x24   : > { %s50_s15 = scalar_lea.vmem [#allocation3], %s593_s2  ;;  %s666_s17 = sld [smem:[#allocation9 + %s593_s2]] }
  0x25   : > { %s59_s16 = sshll.u32 %s50_s15, 4  ;;  %s65_s18 = scalar_lea.vmem [#allocation4], %s593_s2  ;;  %s670_s16 = int_to_ptr.vmem [resolvable:$true] %s59_s16 }
  0x26   : > { %s74_s19 = sshll.u32 %s65_s18, 4  ;;  %s481_s28 = scalar_lea.hbm %s774_s3, 1024  ;;  %s673_s19 = int_to_ptr.vmem [resolvable:$true] %s74_s19 }
  0x28   : > { %s419_s20 = sshll.u32 %s31_s11, 4 }
  0x29   : > { %s35_s23 = scalar_lea.hbm %s774_s3, %s419_s20  ;;  %s420_s24 = sshll.u32 %s662_s14, 4 }
  0x2a   : > { %s479_s25 = scalar_lea.hbm %s35_s23, 16  ;;  %p482_p0 = scmp.lt.u32.totalorder %s35_s23, %s774_s3 }
  0x2b   : > { %p480_p13 = scmp.ne.s32.totalorder %s35_s23, %s479_s25  ;;  %p483_p1 = scmp.lt.u32.totalorder %s481_s28, %s479_s25 }
  0x2c   : > { %p485_p3 = scmp.lt.u32.totalorder %s479_s25, %s35_s23 }
  0x2d   : > { %p484_p2 = por %p483_p1, %p482_p0 }
  0x2f   : > { %p486_p4 = por %p485_p3, %p484_p2 }
  0x31   : > { %p487_p5 = pnand %p486_p4, %p480_p13 }
  0x33   : > { %490 = shalt.err (!%p487_p5)  }
  0x34   : > { %s491_s8 = scalar_lea.vmem %s668_s13, 16  ;;  %s602_s9 = smov [#allocation2]  }
  0x35   : > { %p492_p6 = scmp.ne.s32.totalorder %s668_s13, %s491_s8  ;;  %s493_s10 = sshll.u32 %s602_s9, 4  ;;  %s494_s10 = int_to_ptr.vmem [resolvable:$false] %s493_s10 }
  0x36   : > { %s495_s0 = scalar_lea.vmem %s494_s10, 2048  ;;  %p496_p7 = scmp.lt.s32.totalorder %s668_s13, %s494_s10 }
  0x37   : > { %p497_p8 = scmp.lt.s32.totalorder %s495_s0, %s491_s8 }
  0x39   : > { %p498_p9 = por %p497_p8, %p496_p7 }
  0x3b   : > { %p499_p10 = pnand %p498_p9, %p492_p6 }
  0x3d   : > { %502 = shalt.err (!%p499_p10)  }
  0x3e   : > { %47 = dma.hbm_to_vmem [thread:$0]  %s35_s23, 16, %s668_s13, [#allocation5] }
  0x3f   : > { %s49_s12 = scalar_lea.hbm %s775_s4, %s420_s24  ;;  %s421_s14 = sshll.u32 %s666_s17, 4 }
  0x40   : > { %s503_s15 = scalar_lea.hbm %s49_s12, 16  ;;  %s505_s21 = scalar_lea.hbm %s775_s4, 256 }
  0x41   : > { %p504_p11 = scmp.ne.s32.totalorder %s49_s12, %s503_s15  ;;  %p506_p12 = scmp.lt.u32.totalorder %s49_s12, %s775_s4 }
  0x42   : > { %p507_p13 = scmp.lt.u32.totalorder %s505_s21, %s503_s15  ;;  %p509_p1 = scmp.lt.u32.totalorder %s503_s15, %s49_s12 }
  0x44   : > { %p508_p0 = por %p507_p13, %p506_p12 }
  0x46   : > { %p510_p2 = por %p509_p1, %p508_p0 }
  0x48   : > { %p511_p3 = pnand %p510_p2, %p504_p11 }
  0x4a   : > { %514 = shalt.err (!%p511_p3)  }
  0x4b   : > { %s515_s13 = scalar_lea.vmem %s670_s16, 16  ;;  %s603_s17 = smov [#allocation3]  }
  0x4c   : > { %p516_p4 = scmp.ne.s32.totalorder %s670_s16, %s515_s13  ;;  %s517_s23 = sshll.u32 %s603_s17, 4  ;;  %s518_s23 = int_to_ptr.vmem [resolvable:$false] %s517_s23 }
  0x4d   : > { %s519_s24 = scalar_lea.vmem %s518_s23, 2048  ;;  %p520_p5 = scmp.lt.s32.totalorder %s670_s16, %s518_s23 }
  0x4e   : > { %p521_p6 = scmp.lt.s32.totalorder %s519_s24, %s515_s13 }
  0x50   : > { %p522_p7 = por %p521_p6, %p520_p5 }
  0x52   : > { %p523_p8 = pnand %p522_p7, %p516_p4 }
  0x54   : > { %526 = shalt.err (!%p523_p8)  }
  0x55   : > { %62 = dma.hbm_to_vmem [thread:$0]  %s49_s12, 16, %s670_s16, [#allocation5 + $0x1] }
  0x56   : > { %s64_s29 = scalar_lea.hbm %s774_s3, %s421_s14 }
  0x57   : > { %s527_s30 = scalar_lea.hbm %s64_s29, 16  ;;  %p530_p10 = scmp.lt.u32.totalorder %s64_s29, %s774_s3 }
  0x58   : > { %p528_p9 = scmp.ne.s32.totalorder %s64_s29, %s527_s30  ;;  %p531_p11 = scmp.lt.u32.totalorder %s481_s28, %s527_s30 }
  0x59   : > { %p533_p13 = scmp.lt.u32.totalorder %s527_s30, %s64_s29 }
  0x5a   : > { %p532_p12 = por %p531_p11, %p530_p10 }
  0x5c   : > { %p534_p0 = por %p533_p13, %p532_p12 }
  0x5e   : > { %p535_p1 = pnand %p534_p0, %p528_p9 }
  0x60   : > { %538 = shalt.err (!%p535_p1)  }
  0x61   : > { %s539_s16 = scalar_lea.vmem %s673_s19, 16  ;;  %s604_s10 = smov [#allocation4]  }
  0x62   : > { %p540_p2 = scmp.ne.s32.totalorder %s673_s19, %s539_s16  ;;  %s541_s0 = sshll.u32 %s604_s10, 4  ;;  %s542_s0 = int_to_ptr.vmem [resolvable:$false] %s541_s0 }
  0x63   : > { %s543_s1 = scalar_lea.vmem %s542_s0, 2048  ;;  %p544_p3 = scmp.lt.s32.totalorder %s673_s19, %s542_s0 }
  0x64   : > { %p545_p4 = scmp.lt.s32.totalorder %s543_s1, %s539_s16 }
  0x66   : > { %p546_p5 = por %p545_p4, %p544_p3 }
  0x68   : > { %p547_p6 = pnand %p546_p5, %p540_p2 }
  0x6a   : > { %550 = shalt.err (!%p547_p6)  }
  0x6b   : > { %77 = dma.hbm_to_vmem [thread:$0]  %s64_s29, 16, %s673_s19, [#allocation5 + $0x2] }
  0x6c   : > { %s29_s2 = sadd.s32 1, %s593_s2  }
  0x6d   : > { %p26_p7 = scmp.ge.s32.totalorder %s29_s2, 128  }
  0x6e   :  { %s595_s28 = smov (%p26_p7), 0  }
  0x6f   :  { %28 = sbr.rel (!%p26_p7) target bundleno = 34 (0x22), region = 58 }
  0x76 LB: > { %583 = dma.done.wait [#allocation5], 16  ;;  %s597_s28 = sphi %s595_s28, %s83_s28  }
  0x77   : > { %584 = vsyncadd [#allocation5], 4294967280 }
  0x78   : > { %585 = dma.done.wait [#allocation5 + $0x1], 16 }
  0x79   : > { %586 = vsyncadd [#allocation5 + $0x1], 4294967280 }
  0x7a   : > { %587 = dma.done.wait [#allocation5 + $0x2], 16 }
  0x7b   : > { %588 = vsyncadd [#allocation5 + $0x2], 4294967280  ;;  %s83_s28 = sadd.s32 1, %s597_s28  }
  0x7c   : > { %p80_p8 = scmp.ge.s32.totalorder %s83_s28, 128  }
  0x7d   :  { %v93_v0 = vld [vmem:[#allocation2] sm:$0xff] (%p80_p8)  ;;  %v95_v4 = vld [vmem:[#allocation2 + $0x10] sm:$0xff] (%p80_p8)  ;;  %v94_v8 = vld [vmem:[#allocation2 + $0x8] sm:$0xff] (%p80_p8)  ;;  %vm264_vm0 = vcmask (%p80_p8), 130112   ;;  %vm271_vm1 = vcmask (%p80_p8), 195712   ;;  %vm278_vm2 = vcmask (%p80_p8), 261312  }
  0x7e   :  { %82 = sbr.rel (!%p80_p8) target bundleno = 118 (0x76), region = 69  ;;  %v109_v1 = vld [vmem:[#allocation3] sm:$0xff] (%p80_p8)  ;;  %v111_v5 = vld [vmem:[#allocation3 + $0x10] sm:$0xff] (%p80_p8)  ;;  %v110_v9 = vld [vmem:[#allocation3 + $0x8] sm:$0xff] (%p80_p8)  ;;  %vm285_vm3 = vcmask (%p80_p8), 326912   ;;  %vm292_vm4 = vcmask (%p80_p8), 392512  }
  0x7f   :  { %v141_v2 = vld [vmem:[#allocation4] sm:$0xff] (%p80_p8)  ;;  %v125_v3 = vadd.f32 (%p80_p8), %v109_v1, %v93_v0  ;;  %v143_v6 = vld [vmem:[#allocation4 + $0x10] sm:$0xff] (%p80_p8)  ;;  %v127_v7 = vadd.f32 (%p80_p8), %v111_v5, %v95_v4  ;;  %v142_v10 = vld [vmem:[#allocation4 + $0x8] sm:$0xff] (%p80_p8)  ;;  %v126_v12 = vadd.f32 (%p80_p8), %v110_v9, %v94_v8  ;;  %vm299_vm5 = vcmask (%p80_p8), 458112   ;;  %s605_s3 = smov (%p80_p8), [#allocation10]  }
  0x80   :  { %v96_v13 = vld [vmem:[#allocation2 + $0x18] sm:$0xff] (%p80_p8)  ;;  %v97_v18 = vld [vmem:[#allocation2 + $0x20] sm:$0xff] (%p80_p8)  ;;  %v98_v24 = vld [vmem:[#allocation2 + $0x28] sm:$0xff] (%p80_p8)  ;;  %vm306_vm6 = vcmask (%p80_p8), 523712   ;;  %vm313_vm7 = vcmask (%p80_p8), 589312   ;;  %vm320_vm8 = vcmask (%p80_p8), 654912  }
  0x81   :  { %v157_v11 = vsub.f32 (%p80_p8), %v125_v3, %v141_v2  ;;  %v112_v14 = vld [vmem:[#allocation3 + $0x18] sm:$0xff] (%p80_p8)  ;;  %v159_v16 = vsub.f32 (%p80_p8), %v127_v7, %v143_v6  ;;  %v113_v19 = vld [vmem:[#allocation3 + $0x20] sm:$0xff] (%p80_p8)  ;;  %v158_v22 = vsub.f32 (%p80_p8), %v126_v12, %v142_v10  ;;  %v114_v25 = vld [vmem:[#allocation3 + $0x28] sm:$0xff] (%p80_p8)  ;;  %vm327_vm9 = vcmask (%p80_p8), 720512   ;;  %s372_s4 = sshll.u32 (%p80_p8), %s605_s3, 4  ;;  %s373_s4 = int_to_ptr.vmem [resolvable:$true] %s372_s4 }
  0x82   :  { %v144_v15 = vld [vmem:[#allocation4 + $0x18] sm:$0xff] (%p80_p8)  ;;  %v128_v17 = vadd.f32 (%p80_p8), %v112_v14, %v96_v13  ;;  %v145_v20 = vld [vmem:[#allocation4 + $0x20] sm:$0xff] (%p80_p8)  ;;  %v129_v23 = vadd.f32 (%p80_p8), %v113_v19, %v97_v18  ;;  %v146_v26 = vld [vmem:[#allocation4 + $0x28] sm:$0xff] (%p80_p8)  ;;  %v130_v29 = vadd.f32 (%p80_p8), %v114_v25, %v98_v24  ;;  %vm334_vm10 = vcmask (%p80_p8), 786112   ;;  %s551_s2 = scalar_lea.vmem (%p80_p8), %s373_s4, 16  ;;  %s555_s19 = scalar_lea.vmem (%p80_p8), %s373_s4, 32 }
  0x83   :  { %v173_v21 = vand.u32 (%p80_p8), 2147483647, %v157_v11  ;;  %v175_v27 = vand.u32 (%p80_p8), 2147483647, %v159_v16  ;;  %v99_v30 = vld [vmem:[#allocation2 + $0x30] sm:$0xff] (%p80_p8)  ;;  %v100_v35 = vld [vmem:[#allocation2 + $0x38] sm:$0xff] (%p80_p8)  ;;  %p552_p9 = scmp.ne.s32.totalorder (%p80_p8), %s373_s4, %s551_s2  ;;  %p556_p10 = scmp.lt.s32.totalorder (%p80_p8), %s373_s4, %s373_s4 }
  0x84   :  { %v160_v28 = vsub.f32 (%p80_p8), %v128_v17, %v144_v15  ;;  %v115_v31 = vld [vmem:[#allocation3 + $0x30] sm:$0xff] (%p80_p8)  ;;  %v174_v32 = vand.u32 (%p80_p8), 2147483647, %v158_v22  ;;  %v161_v33 = vsub.f32 (%p80_p8), %v129_v23, %v145_v20  ;;  %v116_v36 = vld [vmem:[#allocation3 + $0x38] sm:$0xff] (%p80_p8)  ;;  %v162_v38 = vsub.f32 (%p80_p8), %v130_v29, %v146_v26  ;;  %v101_v41 = vld [vmem:[#allocation2 + $0x40] sm:$0xff] (%p80_p8)  ;;  %p557_p11 = scmp.lt.s32.totalorder (%p80_p8), %s555_s19, %s551_s2 }
  0x85   :  { %189 = vadd.xlane.f32.xlu0 %v173_v21  ;;  %v131_v34 = vadd.f32 %v115_v31, %v99_v30  ;;  %193 = vadd.xlane.f32.xlu1 %v175_v27  ;;  %v147_v39 = vld [vmem:[#allocation4 + $0x30] sm:$0xff]  ;;  %v132_v40 = vadd.f32 %v116_v36, %v100_v35  ;;  %v117_v42 = vld [vmem:[#allocation3 + $0x40] sm:$0xff]  ;;  %v148_v43 = vld [vmem:[#allocation4 + $0x38] sm:$0xff]  ;;  %vm341_vm11 = vcmask 851712   ;;  %vm348_vm12 = vcmask 917312  }
  0x86   :  { %v176_v37 = vand.u32 2147483647, %v160_v28  ;;  %v102_v44 = vld [vmem:[#allocation2 + $0x48] sm:$0xff]  ;;  %v177_v46 = vand.u32 2147483647, %v161_v33  ;;  %v133_v48 = vadd.f32 %v117_v42, %v101_v41  ;;  %v149_v51 = vld [vmem:[#allocation4 + $0x40] sm:$0xff]  ;;  %p558_p12 = por %p557_p11, %p556_p10 }
  0x87   :  { %v118_v45 = vld [vmem:[#allocation3 + $0x48] sm:$0xff]  ;;  %v163_v47 = vsub.f32 %v131_v34, %v147_v39  ;;  %v178_v49 = vand.u32 2147483647, %v162_v38  ;;  %v164_v50 = vsub.f32 %v132_v40, %v148_v43  ;;  %v103_v53 = vld [vmem:[#allocation2 + $0x50] sm:$0xff]  ;;  %v104_v56 = vld [vmem:[#allocation2 + $0x58] sm:$0xff]  ;;  %vm355_vm13 = vcmask 982912  }
  0x88   :  { %v134_v52 = vadd.f32 %v118_v45, %v102_v44  ;;  %v119_v54 = vld [vmem:[#allocation3 + $0x50] sm:$0xff]  ;;  %v150_v55 = vld [vmem:[#allocation4 + $0x48] sm:$0xff]  ;;  %v120_v57 = vld [vmem:[#allocation3 + $0x58] sm:$0xff]  ;;  %v165_v59 = vsub.f32 %v133_v48, %v149_v51  ;;  %vm362_vm14 = vcmask 1048512   ;;  %p559_p13 = pnand %p558_p12, %p552_p9 }
  0x89   :  { %191 = vadd.xlane.f32.xlu0 %v174_v32  ;;  %195 = vadd.xlane.f32.xlu1 %v176_v37  ;;  %v179_v58 = vand.u32 2147483647, %v163_v47  ;;  %v135_v60 = vadd.f32 %v119_v54, %v103_v53  ;;  %v180_v61 = vand.u32 2147483647, %v164_v50  ;;  %v151_v63 = vld [vmem:[#allocation4 + $0x50] sm:$0xff]  ;;  %v136_v0 = vadd.f32 %v120_v57, %v104_v56  ;;  %v105_v1 = vld [vmem:[#allocation2 + $0x60] sm:$0xff] }
  0x8a   :  { %v166_v62 = vsub.f32 %v134_v52, %v150_v55  ;;  %v121_v2 = vld [vmem:[#allocation3 + $0x60] sm:$0xff]  ;;  %v152_v3 = vld [vmem:[#allocation4 + $0x58] sm:$0xff]  ;;  %v106_v4 = vld [vmem:[#allocation2 + $0x68] sm:$0xff]  ;;  %v181_v6 = vand.u32 2147483647, %v165_v59  ;;  %v253_v32 = vlaneseq }
  0x8b   :  { %v122_v5 = vld [vmem:[#allocation3 + $0x68] sm:$0xff]  ;;  %v167_v7 = vsub.f32 %v135_v60, %v151_v63  ;;  %v137_v8 = vadd.f32 %v121_v2, %v105_v1  ;;  %v168_v10 = vsub.f32 %v136_v0, %v152_v3  ;;  %v153_v11 = vld [vmem:[#allocation4 + $0x60] sm:$0xff]  ;;  %v107_v13 = vld [vmem:[#allocation2 + $0x70] sm:$0xff] }
  0x8c   :  { %v182_v9 = vand.u32 2147483647, %v166_v62  ;;  %v138_v12 = vadd.f32 %v122_v5, %v106_v4  ;;  %v123_v14 = vld [vmem:[#allocation3 + $0x70] sm:$0xff]  ;;  %v154_v15 = vld [vmem:[#allocation4 + $0x68] sm:$0xff]  ;;  %v108_v16 = vld [vmem:[#allocation2 + $0x78] sm:$0xff]  ;;  %v724_v33 = vand.u32 127, %v253_v32 }
  0x8d   :  { %197 = vadd.xlane.f32.xlu0 %v177_v46  ;;  %199 = vadd.xlane.f32.xlu1 %v178_v49  ;;  %v124_v17 = vld [vmem:[#allocation3 + $0x78] sm:$0xff]  ;;  %v183_v18 = vand.u32 2147483647, %v167_v7  ;;  %v169_v19 = vsub.f32 %v137_v8, %v153_v11  ;;  %v139_v20 = vadd.f32 %v123_v14, %v107_v13  ;;  %v184_v21 = vand.u32 2147483647, %v168_v10  ;;  %v155_v23 = vld [vmem:[#allocation4 + $0x70] sm:$0xff] }
  0x8e   :  { %v170_v22 = vsub.f32 %v138_v12, %v154_v15  ;;  %v140_v24 = vadd.f32 %v124_v17, %v108_v16  ;;  %v156_v25 = vld [vmem:[#allocation4 + $0x78] sm:$0xff]  ;;  %v726_v34 = vshrl.u32 %v253_v32, 7  ;;  %v259_v35 = vadd.s32 4294967288, %v724_v33 }
  0x8f   :  { %v185_v26 = vand.u32 2147483647, %v169_v19  ;;  %v171_v27 = vsub.f32 %v139_v20, %v155_v23  ;;  %v266_v37 = vadd.s32 4294967280, %v724_v33  ;;  %v273_v38 = vadd.s32 4294967272, %v724_v33 }
  0x90   :  { %v186_v28 = vand.u32 2147483647, %v170_v22  ;;  %v172_v29 = vsub.f32 %v140_v24, %v156_v25  ;;  %v257_v40 = vsub.s32 %v724_v33, %v726_v34  ;;  %v262_v42 = vsub.s32 %v259_v35, %v726_v34 }
  0x91   :  { %201 = vadd.xlane.f32.xlu0 %v179_v58  ;;  %203 = vadd.xlane.f32.xlu1 %v180_v61  ;;  %v187_v30 = vand.u32 2147483647, %v171_v27  ;;  %v280_v43 = vadd.s32 4294967264, %v724_v33  ;;  %v269_v44 = vsub.s32 %v266_v37, %v726_v34  ;;  %v276_v47 = vsub.s32 %v273_v38, %v726_v34 }
  0x92   :  { %v188_v31 = vand.u32 2147483647, %v172_v29  ;;  %v287_v48 = vadd.s32 4294967256, %v724_v33  ;;  %v294_v55 = vadd.s32 4294967248, %v724_v33  ;;  %v301_v60 = vadd.s32 4294967240, %v724_v33 }
  0x93   :  { %v283_v54 = vsub.s32 %v280_v43, %v726_v34  ;;  %v308_v5 = vadd.s32 4294967232, %v724_v33  ;;  %v322_v16 = vadd.s32 4294967216, %v724_v33  ;;  %v343_v35 = vadd.s32 4294967192, %v724_v33 }
  0x94   :  { %v290_v59 = vsub.s32 %v287_v48, %v726_v34  ;;  %v297_v4 = vsub.s32 %v294_v55, %v726_v34  ;;  %v304_v8 = vsub.s32 %v301_v60, %v726_v34 }
  0x95   :  { %205 = vadd.xlane.f32.xlu0 %v181_v6  ;;  %207 = vadd.xlane.f32.xlu1 %v182_v9  ;;  %v315_v9 = vadd.s32 4294967224, %v724_v33  ;;  %v311_v15 = vsub.s32 %v308_v5, %v726_v34  ;;  %v325_v27 = vsub.s32 %v322_v16, %v726_v34 }
  0x97   :  { %v318_v20 = vsub.s32 %v315_v9, %v726_v34 }
  0x99   :  { %209 = vadd.xlane.f32.xlu0 %v183_v18  ;;  %211 = vadd.xlane.f32.xlu1 %v184_v21  ;;  %v329_v21 = vadd.s32 4294967208, %v724_v33 }
  0x9b   :  { %v332_v32 = vsub.s32 %v329_v21, %v726_v34 }
  0x9d   :  { %213 = vadd.xlane.f32.xlu0 %v185_v26  ;;  %215 = vadd.xlane.f32.xlu1 %v186_v28  ;;  %v336_v28 = vadd.s32 4294967200, %v724_v33 }
  0xa1   :  { %217 = vadd.xlane.f32.xlu0 %v187_v30  ;;  %219 = vadd.xlane.f32.xlu1 %v188_v31 }
 0x112   :  { %v190_v36 = vpop.xlane.xlu0 %189  ;;  %v194_v39 = vpop.xlane.xlu1 %193 }
 0x113   :  { %v221_v41 = vsub.f32 0.0, %v190_v36  ;;  %v223_v45 = vsub.f32 0.0, %v194_v39 }
 0x115   :  { %v258_v52 = vrot.slane %v221_v41, %v257_v40  ;;  %v270_v56 = vrot.slane %v223_v45, %v269_v44  ;;  %v339_v41 = vsub.s32 %v336_v28, %v726_v34 }
 0x116   :  { %v192_v46 = vpop.xlane.xlu0 %191  ;;  %v196_v50 = vpop.xlane.xlu1 %195 }
 0x117   :  { %v222_v49 = vsub.f32 0.0, %v192_v46  ;;  %v224_v51 = vsub.f32 0.0, %v196_v50  ;;  %v346_v46 = vsub.s32 %v343_v35, %v726_v34 }
 0x119   :  { %v263_v53 = vrot.slane %v222_v49, %v262_v42  ;;  %v277_v57 = vrot.slane %v224_v51, %v276_v47  ;;  %v350_v42 = vadd.s32 4294967184, %v724_v33  ;;  %v357_v47 = vadd.s32 4294967176, %v724_v33 }
 0x11a   :  { %v198_v58 = vpop.xlane.xlu0 %197  ;;  %v200_v63 = vpop.xlane.xlu1 %199 }
 0x11b   :  { %v265_v61 = vsel %vm264_vm0, %v263_v53, %v258_v52  ;;  %v225_v62 = vsub.f32 0.0, %v198_v58  ;;  %v226_v1 = vsub.f32 0.0, %v200_v63  ;;  %v353_v53 = vsub.s32 %v350_v42, %v726_v34 }
 0x11c   :  { %v272_v0 = vsel %vm271_vm1, %v270_v56, %v265_v61 }
 0x11d   :  { %v279_v2 = vsel %vm278_vm2, %v277_v57, %v272_v0  ;;  %v284_v3 = vrot.slane %v225_v62, %v283_v54  ;;  %v291_v6 = vrot.slane %v226_v1, %v290_v59  ;;  %v360_v57 = vsub.s32 %v357_v47, %v726_v34 }
 0x11e   :  { %v202_v7 = vpop.xlane.xlu0 %201  ;;  %v204_v12 = vpop.xlane.xlu1 %203 }
 0x11f   :  { %v286_v10 = vsel %vm285_vm3, %v284_v3, %v279_v2  ;;  %v227_v11 = vsub.f32 0.0, %v202_v7  ;;  %v228_v13 = vsub.f32 0.0, %v204_v12 }
 0x120   :  { %v293_v17 = vsel %vm292_vm4, %v291_v6, %v286_v10 }
 0x121   :  { %v298_v14 = vrot.slane %v227_v11, %v297_v4  ;;  %v305_v18 = vrot.slane %v228_v13, %v304_v8 }
 0x122   :  { %v206_v19 = vpop.xlane.xlu0 %205  ;;  %v208_v24 = vpop.xlane.xlu1 %207 }
 0x123   :  { %v300_v22 = vsel %vm299_vm5, %v298_v14, %v293_v17  ;;  %v229_v23 = vsub.f32 0.0, %v206_v19  ;;  %v230_v25 = vsub.f32 0.0, %v208_v24 }
 0x124   :  { %v307_v29 = vsel %vm306_vm6, %v305_v18, %v300_v22 }
 0x125   :  { %v312_v26 = vrot.slane %v229_v23, %v311_v15  ;;  %v319_v30 = vrot.slane %v230_v25, %v318_v20 }
 0x126   :  { %v210_v31 = vpop.xlane.xlu0 %209  ;;  %v212_v38 = vpop.xlane.xlu1 %211 }
 0x127   :  { %v314_v36 = vsel %vm313_vm7, %v312_v26, %v307_v29  ;;  %v231_v37 = vsub.f32 0.0, %v210_v31  ;;  %v232_v39 = vsub.f32 0.0, %v212_v38 }
 0x128   :  { %v321_v43 = vsel %vm320_vm8, %v319_v30, %v314_v36 }
 0x129   :  { %v326_v40 = vrot.slane %v231_v37, %v325_v27  ;;  %v333_v44 = vrot.slane %v232_v39, %v332_v32 }
 0x12a   :  { %v214_v45 = vpop.xlane.xlu0 %213  ;;  %v216_v50 = vpop.xlane.xlu1 %215 }
 0x12b   :  { %v328_v48 = vsel %vm327_vm9, %v326_v40, %v321_v43  ;;  %v233_v49 = vsub.f32 0.0, %v214_v45  ;;  %v234_v51 = vsub.f32 0.0, %v216_v50 }
 0x12c   :  { %v335_v54 = vsel %vm334_vm10, %v333_v44, %v328_v48 }
 0x12d   :  { %v340_v52 = vrot.slane %v233_v49, %v339_v41  ;;  %v347_v55 = vrot.slane %v234_v51, %v346_v46 }
 0x12e   :  { %v218_v56 = vpop.xlane.xlu0 %217  ;;  %v220_v60 = vpop.xlane.xlu1 %219 }
 0x12f   :  { %v342_v58 = vsel %vm341_vm11, %v340_v52, %v335_v54  ;;  %v235_v59 = vsub.f32 0.0, %v218_v56  ;;  %v236_v61 = vsub.f32 0.0, %v220_v60 }
 0x130   :  { %v349_v63 = vsel %vm348_vm12, %v347_v55, %v342_v58 }
 0x131   :  { %v354_v33 = vrot.slane %v235_v59, %v353_v53  ;;  %v361_v62 = vrot.slane %v236_v61, %v360_v57 }
 0x133   :  { %v356_v0 = vsel %vm355_vm13, %v354_v33, %v349_v63 }
 0x134   :  { %v363_v1 = vsel %vm362_vm14, %v361_v62, %v356_v0 }
 0x135   :  { %365 = vst [vmem:[#allocation10] sm:$0x1] %v363_v1 }
 0x136   :  { %562 = shalt.err (!%p559_p13)
}
 0x137   :  { %s563_s14 = scalar_lea.hbm %s776_s5, 16 }
 0x138   :  { %p564_p0 = scmp.ne.s32.totalorder %s776_s5, %s563_s14  ;;  %p567_p1 = scmp.lt.u32.totalorder %s563_s14, %s776_s5 }
 0x13a   :  { %p569_p2 = pnand %p567_p1, %p564_p0 }
 0x13c   :  { %572 = shalt.err (!%p569_p2)
}
 0x13d   :  { %375 = dma.vmem_to_hbm [thread:$0]  %s373_s4, 16, %s776_s5, [#allocation11]  }
 0x13e   :  { %589 = dma.done.wait [#allocation11], 16  }
 0x13f   :  { %590 = vsyncadd [#allocation11], 4294967280 }
 0x140   :  { %379 = vsyncpa [#allocation11], 1 }
 0x141   :  { %380 = vsyncmov [#allocation5] }
 0x144   :  { %s381_s13 = vpop.sfrf %380 }
 0x145   :  { %p422_p3 = scmp.ne.s32.totalorder %s381_s13, 0 }
 0x147   :  { %385 = shalt.err (%p422_p3)  }
 0x148   :  { %387 = vsyncmov [#allocation5 + $0x1] }
 0x14b   :  { %s388_s17 = vpop.sfrf %387 }
 0x14c   :  { %p423_p4 = scmp.ne.s32.totalorder %s388_s17, 0 }
 0x14e   :  { %392 = shalt.err (%p423_p4)  }
 0x14f   :  { %394 = vsyncmov [#allocation5 + $0x2] }
 0x152   :  { %s395_s23 = vpop.sfrf %394 }
 0x153   :  { %p424_p5 = scmp.ne.s32.totalorder %s395_s23, 0 }
 0x155   :  { %399 = shalt.err (%p424_p5)  }

</bundles_post_ra>
